<compile_context>
chip_gen: v5e
topology: v5e:2x2
jax: 0.10.0
libtpu: 0.0.40
codegen_flags: <defaults>
</compile_context>

<pallas_src>
import functools

import jax
import jax.numpy as jnp
from jax.experimental import pallas as pl
from jax.experimental.pallas import tpu as pltpu


def _round_up(n: int, m: int) -> int:
    return ((n + m - 1) // m) * m


def _fused_mlp_kernel(x_ref, *refs, n_layers: int):
    # refs = (w1, b1, w2, b2, ..., wN, bN, o_ref).
    # Only the output (N) dims of weights/biases/output are 128-padded; the
    # padded hidden lanes are exactly zero (zero weight cols + zero bias +
    # tanh(0)=0), so they never contaminate later layers.
    o_ref = refs[-1]
    h = x_ref[...]
    for i in range(n_layers):
        w = refs[2 * i][...]
        b = refs[2 * i + 1][...]
        # bf16 (or f32) MXU inputs, f32 accumulation on the MXU.
        h = jnp.dot(h.astype(w.dtype), w, preferred_element_type=jnp.float32)
        h = h + b.astype(jnp.float32)
        if i < n_layers - 1:
            h = jnp.tanh(h)  # EUP slot, on the f32 accumulator (v5e-safe)
            # nn.Dropout(p=0.2): identity at inference.
    o_ref[...] = h.astype(o_ref.dtype)


def _choose_block_m(batch: int, x_dtype) -> int:
    """Batch tile: single block when small, big (>=2) tiles when large."""
    # bf16 packs 16 rows per sublane group; f32 packs 8.
    sublane = 16 if jnp.dtype(x_dtype) == jnp.dtype(jnp.bfloat16) else 8
    if batch <= 128:
        return batch  # one block; block dim == full array dim is always legal
    # Large batch: 512-row tiles for HBM-roofline (sweep 512..2048 if HBM-bound),
    # but guarantee >= 2 grid blocks so both v7x TensorCores are used.
    tile = min(512, _round_up(pl.cdiv(batch, 2), 128))
    return _round_up(tile, sublane)


def fused_mlp_forward(x, padded_params, *, out_dim: int):
    """Single-kernel MLP forward.  padded_params: list of (w_t_pad, b_pad)."""
    B, d_in = x.shape
    n_layers = len(padded_params)
    out_pad = padded_params[-1][0].shape[1]

    block_m = _choose_block_m(B, x.dtype)
    grid = (pl.cdiv(B, block_m),)

    # x goes in UNPADDED: last block dim == full d_in (legal), no K padding.
    in_specs = [pl.BlockSpec((block_m, d_in), lambda i: (i, 0))]
    flat_params = []
    for w, b in padded_params:
        # Grid-invariant operands: constant index_map, full-array blocks.
        in_specs.append(pl.BlockSpec(w.shape, lambda i: (0, 0)))
        in_specs.append(pl.BlockSpec(b.shape, lambda i: (0, 0)))
        flat_params.extend([w, b])

    kernel = functools.partial(_fused_mlp_kernel, n_layers=n_layers)
    out = pl.pallas_call(
        kernel,
        out_shape=jax.ShapeDtypeStruct((B, out_pad), x.dtype),
        grid=grid,
        in_specs=in_specs,
        out_specs=pl.BlockSpec((block_m, out_pad), lambda i: (i, 0)),
        compiler_params=pltpu.CompilerParams(
            dimension_semantics=("parallel",)),
    )(x, *flat_params)

    # One lane-slice back to the real output width (consumer-side).
    return out[:, :out_dim]


class PallasMLP:
    """Mirror of the PyTorch MLP: Linear layers with Tanh (+Dropout) between."""

    def __init__(self, sizes, key, bias=True, dtype=jnp.float32,
                 mxu_dtype=jnp.float32):
        # mxu_dtype=jnp.bfloat16 enables the bf16 MXU path (v6e/v7x throughput,
        # half the weight VMEM/HBM bytes); accumulation/tanh remain f32.
        self.sizes = tuple(sizes)
        self.bias = bias
        self.params = []          # unpadded f32 (w_t, b) for reference checking
        self.padded_params = []   # lane(N)-padded, mxu_dtype copies for the kernel
        for i in range(len(sizes) - 1):
            key, wk, bk = jax.random.split(key, 3)
            fan_in = sizes[i]
            bound = 1.0 / (fan_in ** 0.5)
            # PyTorch nn.Linear weight: (out, in); store transposed (in, out).
            w = jax.random.uniform(
                wk, (sizes[i + 1], sizes[i]), dtype, minval=-bound, maxval=bound
            )
            if bias:
                b = jax.random.uniform(
                    bk, (sizes[i + 1],), dtype, minval=-bound, maxval=bound
                )
            else:
                b = jnp.zeros((sizes[i + 1],), dtype)
            w_t = w.T                              # (in, out)
            b_row = b.reshape(1, -1)               # (1, out)
            self.params.append((w_t, b_row))

            # K (rows): layer 0 keeps the raw d_in (no K padding); later layers
            # match the previous layer's 128-padded output width (those padded
            # hidden lanes are exactly zero).
            # N (cols): always padded to 128 -> lane-dense stores / MXU tiles.
            k_dim = sizes[i] if i == 0 else _round_up(sizes[i], 128)
            n_pad = _round_up(sizes[i + 1], 128)
            w_pad = jnp.zeros((k_dim, n_pad), mxu_dtype).at[
                : sizes[i], : sizes[i + 1]].set(w_t.astype(mxu_dtype))
            b_pad = jnp.zeros((1, n_pad), dtype).at[:, : sizes[i + 1]].set(b_row)
            self.padded_params.append((w_pad, b_pad))

        # One jitted, fused forward: a single pallas_call for the whole MLP.
        self._fwd = jax.jit(
            functools.partial(fused_mlp_forward, out_dim=self.sizes[-1])
        )

    def __call__(self, x):
        return self._fwd(x, self.padded_params)


def reference_mlp(x, params):
    n_layers = len(params)
    for i, (w_t, b) in enumerate(params):
        x = x @ w_t + b
        if i < n_layers - 1:
            x = jnp.tanh(x)
    return x


if __name__ == "__main__":
    key = jax.random.PRNGKey(0)
    k_param, k_x = jax.random.split(key)

    sizes = (32, 64, 16)   # clip feature -> hidden -> prefix embedding
    batch = 8

    x = jax.random.normal(k_x, (batch, sizes[0]), jnp.float32)

    # f32 MXU path: tight check against the f32 reference.
    mlp = PallasMLP(sizes, k_param)
    out = jax.block_until_ready(mlp(x))
    ref = reference_mlp(x, mlp.params)
    assert out.shape == (batch, sizes[-1])
    assert jnp.allclose(out, ref, atol=1e-5, rtol=1e-5)

    # bf16-weight MXU path (v6e/v7x perf option): looser tolerance vs f32 ref.
    mlp_bf16 = PallasMLP(sizes, k_param, mxu_dtype=jnp.bfloat16)
    out_bf16 = jax.block_until_ready(mlp_bf16(x))
    assert out_bf16.shape == (batch, sizes[-1])
    assert jnp.allclose(out_bf16, ref, atol=5e-2, rtol=5e-2)

    print("KERNEL_OK")
</pallas_src>

<mosaic_0001>
module attributes {stable_mosaic.version = 11 : i64} {
  func.func @_fused_mlp_kernel(%arg0: i32, %arg1: memref<8x32xf32, #tpu.memory_space<vmem>>, %arg2: memref<32x128xf32, #tpu.memory_space<vmem>>, %arg3: memref<1x128xf32, #tpu.memory_space<vmem>>, %arg4: memref<128x128xf32, #tpu.memory_space<vmem>>, %arg5: memref<1x128xf32, #tpu.memory_space<vmem>>, %arg6: memref<8x128xf32, #tpu.memory_space<vmem>>) attributes {dimension_semantics = [#tpu.dimension_semantics<parallel>], iteration_bounds = array<i64: 1>, scalar_prefetch = 0 : i64, scratch_operands = 0 : i64, tpu.core_type = #tpu.core_type<tc>, window_params = [{transform_indices = @transform_0, window_bounds = array<i64: 8, 32>}, {pipeline_mode = #tpu.pipeline_mode<synchronous>, transform_indices = @transform_1, window_bounds = array<i64: 32, 128>}, {pipeline_mode = #tpu.pipeline_mode<synchronous>, transform_indices = @transform_2, window_bounds = array<i64: 1, 128>}, {pipeline_mode = #tpu.pipeline_mode<synchronous>, transform_indices = @transform_3, window_bounds = array<i64: 128, 128>}, {pipeline_mode = #tpu.pipeline_mode<synchronous>, transform_indices = @transform_4, window_bounds = array<i64: 1, 128>}, {transform_indices = @transform_5, window_bounds = array<i64: 8, 128>}]} {
    %c0 = arith.constant 0 : index
    %c0_0 = arith.constant 0 : index
    %0 = vector.load %arg1[%c0, %c0_0] : memref<8x32xf32, #tpu.memory_space<vmem>>, vector<8x32xf32>
    %c0_1 = arith.constant 0 : index
    %c0_2 = arith.constant 0 : index
    %1 = vector.load %arg2[%c0_1, %c0_2] : memref<32x128xf32, #tpu.memory_space<vmem>>, vector<32x128xf32>
    %c0_3 = arith.constant 0 : index
    %c0_4 = arith.constant 0 : index
    %2 = vector.load %arg3[%c0_3, %c0_4] : memref<1x128xf32, #tpu.memory_space<vmem>>, vector<1x128xf32>
    %cst = arith.constant dense<0.000000e+00> : vector<8x128xf32>
    %3 = tpu.matmul %0, %1, %cst {dimension_numbers = #tpu.dot_dimension_numbers<[1], [0], [0], [1], [0, 0, 1, 1], [], []>} : vector<8x32xf32>, vector<32x128xf32>, vector<8x128xf32> -> vector<8x128xf32>
    %4 = vector.broadcast %2 : vector<1x128xf32> to vector<8x128xf32>
    %5 = arith.addf %3, %4 : vector<8x128xf32>
    %6 = math.tanh %5 : vector<8x128xf32>
    %c0_5 = arith.constant 0 : index
    %c0_6 = arith.constant 0 : index
    %7 = vector.load %arg4[%c0_5, %c0_6] : memref<128x128xf32, #tpu.memory_space<vmem>>, vector<128x128xf32>
    %c0_7 = arith.constant 0 : index
    %c0_8 = arith.constant 0 : index
    %8 = vector.load %arg5[%c0_7, %c0_8] : memref<1x128xf32, #tpu.memory_space<vmem>>, vector<1x128xf32>
    %cst_9 = arith.constant dense<0.000000e+00> : vector<8x128xf32>
    %9 = tpu.matmul %6, %7, %cst_9 {dimension_numbers = #tpu.dot_dimension_numbers<[1], [0], [0], [1], [0, 0, 1, 1], [], []>} : vector<8x128xf32>, vector<128x128xf32>, vector<8x128xf32> -> vector<8x128xf32>
    %10 = vector.broadcast %8 : vector<1x128xf32> to vector<8x128xf32>
    %11 = arith.addf %9, %10 : vector<8x128xf32>
    %c0_10 = arith.constant 0 : index
    %c0_11 = arith.constant 0 : index
    %12 = vector.load %arg6[%c0_10, %c0_11] : memref<8x128xf32, #tpu.memory_space<vmem>>, vector<8x128xf32>
    tpu.vector_store %arg6[%c0_10, %c0_11], %11 {strides = array<i32>} : memref<8x128xf32, #tpu.memory_space<vmem>>, vector<8x128xf32>,
    return
  }
  func.func @transform_0(%arg0: i32) -> (i32, i32) {
    %c0_i32 = arith.constant 0 : i32
    %c0_i32_0 = arith.constant 0 : i32
    return %arg0, %c0_i32 : i32, i32
  }
  func.func @transform_1(%arg0: i32) -> (i32, i32) {
    %c0_i32 = arith.constant 0 : i32
    %c0_i32_0 = arith.constant 0 : i32
    %c0_i32_1 = arith.constant 0 : i32
    return %c0_i32, %c0_i32_0 : i32, i32
  }
  func.func @transform_2(%arg0: i32) -> (i32, i32) {
    %c0_i32 = arith.constant 0 : i32
    %c0_i32_0 = arith.constant 0 : i32
    %c0_i32_1 = arith.constant 0 : i32
    return %c0_i32, %c0_i32_0 : i32, i32
  }
  func.func @transform_3(%arg0: i32) -> (i32, i32) {
    %c0_i32 = arith.constant 0 : i32
    %c0_i32_0 = arith.constant 0 : i32
    %c0_i32_1 = arith.constant 0 : i32
    return %c0_i32, %c0_i32_0 : i32, i32
  }
  func.func @transform_4(%arg0: i32) -> (i32, i32) {
    %c0_i32 = arith.constant 0 : i32
    %c0_i32_0 = arith.constant 0 : i32
    %c0_i32_1 = arith.constant 0 : i32
    return %c0_i32, %c0_i32_0 : i32, i32
  }
  func.func @transform_5(%arg0: i32) -> (i32, i32) {
    %c0_i32 = arith.constant 0 : i32
    %c0_i32_0 = arith.constant 0 : i32
    return %arg0, %c0_i32 : i32, i32
  }
}

</mosaic_0001>

<bundles_post_ra>
// kernel: fused_mlp_forward.1
= control target key start
LH: loop header
LB: loop body
LE: loop exit
PB: predicated region body
PF: predicated region fallthrough
CT: control target
= control target key end

     0   :  { %10 = vsyncpa [#allocation3], 0  ;;  %s326_s0 = inlined_call_operand.hbm [shape: f32[8,32], index: 0, kind: input, shape index: {}]   ;;  %s327_s1 = inlined_call_operand.hbm [shape: f32[32,128], index: 1, kind: input, shape index: {}]   ;;  %s328_s2 = inlined_call_operand.vmem [shape: f32[1,128], index: 2, kind: input, shape index: {}]   ;;  %s329_s3 = inlined_call_operand.hbm [shape: f32[128,128], index: 3, kind: input, shape index: {}]   ;;  %s330_s4 = inlined_call_operand.vmem [shape: f32[1,128], index: 4, kind: input, shape index: {}]   ;;  %s331_s5 = inlined_call_operand.hbm [shape: f32[8,128], index: 5, kind: output, shape index: {}]  }
   0x1   :  { %11 = vsyncpa [#allocation6], 0  ;;  %s28_s20 = sshll.u32 %s327_s1, 4  ;;  %s29_s20 = int_to_ptr.hbm [resolvable:$true] %s28_s20 }
   0x2   :  { %12 = vsyncpa [#allocation4], 0  ;;  %s272_s21 = smov [#allocation5]   ;;  %s18_s25 = sshll.u32 %s326_s0, 4  ;;  %s19_s25 = int_to_ptr.hbm [resolvable:$true] %s18_s25 }
   0x3   :  { %s30_s22 = sshll.u32 %s272_s21, 4  ;;  %s273_s26 = smov 128   ;;  %s31_s22 = int_to_ptr.vmem [resolvable:$true] %s30_s22 }
   0x4   :  { %s274_s27 = smov 8   ;;  %s275_s28 = smov [#allocation2]  }
   0x5   :  { %36 = dma.hbm_to_vmem [thread:$0]  %s29_s20, 512, %s31_s22, [#allocation6], %s273_s26, %s273_s26, %s274_s27  }
   0x6   :  { %s20_s29 = sshll.u32 %s275_s28, 4  ;;  %s43_s7 = sshll.u32 %s329_s3, 4  ;;  %s21_s29 = int_to_ptr.vmem [resolvable:$true] %s20_s29  ;;  %s44_s7 = int_to_ptr.hbm [resolvable:$true] %s43_s7 }
   0x7   :  { %23 = dma.hbm_to_vmem [thread:$0]  %s19_s25, 128, %s21_s29, [#allocation3]  }
   0x8   :  { %s276_s1 = smov [#allocation7]  }
   0x9   :  { %s45_s8 = sshll.u32 %s276_s1, 4  ;;  %s46_s8 = int_to_ptr.vmem [resolvable:$true] %s45_s8 }
   0xa   :  { %51 = dma.hbm_to_vmem [thread:$0]  %s44_s7, 2048, %s46_s8, [#allocation6], %s273_s26, %s273_s26, %s274_s27  }
   0xb   :  { %266 = dma.done.wait [#allocation3], 128  }
   0xc   :  { %267 = vsyncadd [#allocation3], 4294967168 }
   0xd   :  { %268 = dma.done.wait [#allocation6], 2560  }
   0xe   :  { %269 = vsyncadd [#allocation6], 4294964736  ;;  %v70_v0 = vld [vmem:[#allocation5 + $0x18] sm:$0xff]  ;;  %v69_v1 = vld [vmem:[#allocation5 + $0x10] sm:$0xff]  ;;  %vm75_vm0 = vcmask 261120   ;;  %s277_s11 = smov [#allocation8]  }
   0xf   :  { %91 = vmatpush.msra.mxu0 %v70_v0  ;;  %v115_v2 = vld [vmem:[#allocation7 + $0x78] sm:$0xff]  ;;  %v68_v3 = vld [vmem:[#allocation5 + $0x8] sm:$0xff]  ;;  %v114_v4 = vld [vmem:[#allocation7 + $0x70] sm:$0xff]  ;;  %s146_s12 = sshll.u32 %s277_s11, 4  ;;  %s148_s15 = sshll.u32 %s331_s5, 4  ;;  %s147_s12 = int_to_ptr.vmem [resolvable:$true] %s146_s12  ;;  %s149_s15 = int_to_ptr.hbm [resolvable:$true] %s148_s15 }
  0x10   :  { %120 = vmatpush.msra.mxu1 %v115_v2  ;;  %v113_v5 = vld [vmem:[#allocation7 + $0x68] sm:$0xff]  ;;  %v67_v6 = vld [vmem:[#allocation5] sm:$0xff]  ;;  %v66_v7 = vld [vmem:[#allocation2] sm:$0xff] }
  0x11   :  { %92 = vmatpush.msra.mxu0 %v69_v1  ;;  %v112_v8 = vld [vmem:[#allocation7 + $0x60] sm:$0xff]  ;;  %v111_v9 = vld [vmem:[#allocation7 + $0x58] sm:$0xff]  ;;  %v110_v10 = vld [vmem:[#allocation7 + $0x50] sm:$0xff] }
  0x12   :  { %121 = vmatpush.msra.mxu1 %v114_v4  ;;  %v109_v11 = vld [vmem:[#allocation7 + $0x48] sm:$0xff]  ;;  %v108_v12 = vld [vmem:[#allocation7 + $0x40] sm:$0xff]  ;;  %v107_v13 = vld [vmem:[#allocation7 + $0x38] sm:$0xff] }
  0x13   :  { %93 = vmatpush.msra.mxu0 %v68_v3  ;;  %v106_v14 = vld [vmem:[#allocation7 + $0x30] sm:$0xff]  ;;  %v105_v15 = vld [vmem:[#allocation7 + $0x28] sm:$0xff]  ;;  %v104_v16 = vld [vmem:[#allocation7 + $0x20] sm:$0xff] }
  0x14   :  { %122 = vmatpush.msra.mxu1 %v113_v5  ;;  %v103_v17 = vld [vmem:[#allocation7 + $0x18] sm:$0xff]  ;;  %v102_v18 = vld [vmem:[#allocation7 + $0x10] sm:$0xff]  ;;  %v101_v19 = vld [vmem:[#allocation7 + $0x8] sm:$0xff] }
  0x15   :  { %94 = vmatpush.msra.mxu0 %v67_v6  ;;  %v100_v20 = vld [vmem:[#allocation7] sm:$0xff]  ;;  %v166_v21 = vld [vmem:[%s328_s2] ss:$0 sm:$0xff] }
  0x16   :  { %159 = vmatmul.msk.f32.vlgmr.msra.gmra.mxu0 %vm75_vm0, %v66_v7  ;;  %123 = vmatpush.msra.mxu1 %v112_v8  ;;  %v167_v25 = vld [vmem:[%s330_s4] ss:$0 sm:$0xff] }
  0x18   :  { %124 = vmatpush.msra.mxu1 %v111_v9 }
  0x1a   :  { %125 = vmatpush.msra.mxu1 %v110_v10 }
  0x1c   :  { %126 = vmatpush.msra.mxu1 %v109_v11 }
  0x1e   :  { %127 = vmatpush.msra.mxu1 %v108_v12 }
  0x20   :  { %128 = vmatpush.msra.mxu1 %v107_v13 }
  0x22   :  { %129 = vmatpush.msra.mxu1 %v106_v14 }
  0x24   :  { %130 = vmatpush.msra.mxu1 %v105_v15 }
  0x26   :  { %131 = vmatpush.msra.mxu1 %v104_v16 }
  0x28   :  { %132 = vmatpush.msra.mxu1 %v103_v17 }
  0x2a   :  { %133 = vmatpush.msra.mxu1 %v102_v18 }
  0x2c   :  { %134 = vmatpush.msra.mxu1 %v101_v19 }
  0x2e   :  { %135 = vmatpush.msra.mxu1 %v100_v20 }
  0x93   :  { %v96_v22 = vpop.f32.mrf.mxu0 }
  0x94   :  { %v97_v23 = vadd.f32 %v166_v21, %v96_v22 }
  0x96   :  { %168 = vtanh.f32 %v97_v23 }
  0x9c   :  { %v169_v24 = vpop.eup %168 }
  0x9d   :  { %136 = vmatmul.f32.vlgmr.msra.gmra.mxu1 %v169_v24 }
 0x11a   :  { %v137_v26 = vpop.f32.mrf.mxu1 }
 0x11b   :  { %v138_v27 = vadd.f32 %v167_v25, %v137_v26 }
 0x11d   :  { %140 = vst [vmem:[#allocation8] sm:$0xff] %v138_v27 }
 0x11e   :  { %151 = dma.vmem_to_hbm [thread:$0]  %s147_s12, 128, %s149_s15, [#allocation4]  }
 0x11f   :  { %270 = dma.done.wait [#allocation4], 128  }
 0x120   :  { %271 = vsyncadd [#allocation4], 4294967168 }
 0x121   :  { %156 = vsyncpa [#allocation3], 1 }
 0x122   :  { %157 = vsyncpa [#allocation6], 1 }
 0x123   :  { %158 = vsyncpa [#allocation4], 1 }

</bundles_post_ra>
